<compile_context>
chip_gen: v6e
topology: v6e:2x2x1
jax: 0.10.0
libtpu: 0.0.40
codegen_flags: <defaults>
</compile_context>

<pallas_src>
import functools

import jax
import jax.numpy as jnp
from jax.experimental import pallas as pl
from jax.experimental.pallas import tpu as pltpu


def _round_up(x, m):
    return ((x + m - 1) // m) * m


def fused_conv_pool_gemm_kernel(a_ref, w_ref, b_ref, o_ref, acc_ref, *, precision):
    """Tiled GEMM step.

    a_ref:  (tm, tk)   im2col rows for this (M, K) tile (VMEM)
    w_ref:  (tk, tn)   fused (pool-into-conv) weight tile (VMEM)
    b_ref:  (1, tn)    bias tile (zero-padded)
    o_ref:  (tm, tn)   lane-dense output tile
    acc_ref:(tm, tn)   f32 accumulator scratch (persists across the K axis)
    """
    kk = pl.program_id(2)

    @pl.when(kk == 0)
    def _():
        acc_ref[...] = jnp.zeros_like(acc_ref)

    acc_ref[...] += jnp.dot(
        a_ref[...], w_ref[...],
        preferred_element_type=jnp.float32,
        precision=precision,
    )

    @pl.when(kk == pl.num_programs(2) - 1)
    def _():
        o_ref[...] = (acc_ref[...] + b_ref[...]).astype(o_ref.dtype)


def conv_mean_pool(x_nchw, weight_oihw, bias, kernel_size, compute_dtype=jnp.float32):
    """ConvMeanPool forward. x_nchw: (B, Cin, H, W) -> (B, Cout, H//2, W//2)."""
    B, Cin, H, W = x_nchw.shape
    Cout = weight_oihw.shape[0]
    k = int(kernel_size)

    # Only odd k matches nn.Conv2d(padding=(k-1)//2) "SAME" behavior; even H/W for 2x2 pool.
    assert k % 2 == 1, "ConvMeanPool kernel requires odd kernel_size"
    assert H % 2 == 0 and W % 2 == 0, "H and W must be even for the 2x2 mean pool"

    pad = (k - 1) // 2
    Ho, Wo = H // 2, W // 2
    ke = k + 1                       # effective (pool-fused) kernel extent (even)
    nb = ke // 2                     # taps per spatial dim after 2x2 space-to-depth
    Kdim = ke * ke * Cin             # matmul contraction size
    M = B * Ho * Wo                  # matmul M (all pooled output pixels)
    Npad = _round_up(Cout, 128)      # lane-dense output width

    # ---- wrapper-side layout plumbing (plain XLA) --------------------------------
    # NCHW -> NHWC, spatial zero-pad (matches nn.Conv2d padding=(k-1)//2).
    x = jnp.transpose(x_nchw, (0, 2, 3, 1)).astype(jnp.float32)
    xp = jnp.pad(x, ((0, 0), (pad, pad), (pad, pad), (0, 0)))   # (B, 2*(Ho+pad), 2*(Wo+pad), Cin)

    # Effective fused weights: w_eff[a,b] = 0.25 * sum_{s,t in {0,1}} w[a-s, b-t].
    w_hwio = jnp.transpose(weight_oihw, (2, 3, 1, 0)).astype(jnp.float32)  # (k,k,Cin,Cout)
    w_eff = jnp.zeros((ke, ke, Cin, Cout), jnp.float32)
    for s in (0, 1):
        for t in (0, 1):
            w_eff = w_eff.at[s:s + k, t:t + k].add(w_hwio)
    w_eff = w_eff * 0.25

    # Reorder weight columns to match the space-to-depth column layout:
    # (a, b, cin) with a = 2p+s, b = 2q+t  ->  (p, q, s, t, cin).
    w_perm = w_eff.reshape(nb, 2, nb, 2, Cin, Cout).transpose(0, 2, 1, 3, 4, 5)
    w_flat = w_perm.reshape(Kdim, Cout)

    # 2x2 space-to-depth im2col: nb*nb contiguous slices instead of ke*ke strided ones.
    Hb, Wb = Ho + pad, Wo + pad                                   # 2x2 blocks per dim
    xs = xp.reshape(B, Hb, 2, Wb, 2, Cin).transpose(0, 1, 3, 2, 4, 5)  # (B,Hb,Wb,2,2,Cin)
    taps = [xs[:, p:p + Ho, q:q + Wo] for p in range(nb) for q in range(nb)]
    patches = jnp.stack(taps, axis=3)                              # (B,Ho,Wo,nb*nb,2,2,Cin)
    A = patches.reshape(M, Kdim)

    # ---- tile-size selection (bounded, lane/sublane aligned) ----------------------
    # K: pad to a multiple of 128, pick tk as the largest <=1024 divisor.
    Kpad = _round_up(Kdim, 128)
    nkb = Kpad // 128
    tk = 128
    for d in (8, 7, 6, 5, 4, 3, 2, 1):
        if nkb % d == 0:
            tk = d * 128
            break
    grid_k = Kpad // tk

    # N: 256-wide tiles when possible (fills v6e/v7x 256-wide MXU), else 128.
    tn = 256 if (Npad % 256 == 0) else 128
    grid_n = Npad // tn

    # M: capped tile, at least 2 blocks when possible (v7x has 2 TensorCores).
    TM_CAP = 256
    if M <= 8:
        tm = 8
    elif M <= 2 * TM_CAP:
        tm = max(8, _round_up((M + 1) // 2, 8))
    else:
        tm = TM_CAP
    Mpad = _round_up(M, tm)
    grid_m = Mpad // tm

    # Zero-pad operands to the tiled shapes (mathematically exact).
    A = jnp.pad(A, ((0, Mpad - M), (0, Kpad - Kdim))).astype(compute_dtype)
    w_flat = jnp.pad(w_flat, ((0, Kpad - Kdim), (0, Npad - Cout))).astype(compute_dtype)
    b_flat = jnp.pad(bias.astype(jnp.float32).reshape(1, Cout), ((0, 0), (0, Npad - Cout)))

    # ---- VMEM budget & cost estimate ----------------------------------------------
    in_itemsize = jnp.dtype(compute_dtype).itemsize
    vmem_bytes = (2 * tm * tk * in_itemsize        # double-buffered A tiles
                  + 2 * tk * tn * in_itemsize      # double-buffered W tiles
                  + 2 * tm * tn * 4                # double-buffered output tiles
                  + tm * tn * 4                    # accumulator scratch
                  + 2 * tn * 4                     # bias tiles
                  + (2 << 20))                     # headroom
    vmem_limit = int(min(max(vmem_bytes, 16 << 20), 48 << 20))   # safe on v7x's 64 MiB/TC

    cost = pl.CostEstimate(
        flops=2 * Mpad * Kpad * Npad,
        transcendentals=0,
        bytes_accessed=in_itemsize * (Mpad * Kpad + Kpad * Npad) + 4 * Mpad * Npad,
    )

    precision = (jax.lax.Precision.HIGHEST
                 if jnp.dtype(compute_dtype) == jnp.dtype(jnp.float32)
                 else jax.lax.Precision.DEFAULT)

    # ---- Pallas call ---------------------------------------------------------------
    out_flat = pl.pallas_call(
        functools.partial(fused_conv_pool_gemm_kernel, precision=precision),
        out_shape=jax.ShapeDtypeStruct((Mpad, Npad), jnp.float32),
        grid=(grid_m, grid_n, grid_k),
        in_specs=[
            pl.BlockSpec((tm, tk), lambda i, j, kk: (i, kk)),
            pl.BlockSpec((tk, tn), lambda i, j, kk: (kk, j)),
            pl.BlockSpec((1, tn), lambda i, j, kk: (0, j)),
        ],
        out_specs=pl.BlockSpec((tm, tn), lambda i, j, kk: (i, j)),
        scratch_shapes=[pltpu.VMEM((tm, tn), jnp.float32)],
        compiler_params=pltpu.CompilerParams(
            dimension_semantics=("parallel", "parallel", "arbitrary"),
            vmem_limit_bytes=vmem_limit,
        ),
        cost_estimate=cost,
    )(A, w_flat, b_flat)

    # Slice real rows/channels, reshape back to NCHW.
    out = out_flat[:M, :Cout].reshape(B, Ho, Wo, Cout)
    return jnp.transpose(out, (0, 3, 1, 2)).astype(x_nchw.dtype)


def _reference(x_nchw, weight_oihw, bias):
    """Pure-JAX reference matching the PyTorch forward (NCHW)."""
    x = jnp.transpose(x_nchw, (0, 2, 3, 1))                 # NHWC
    w = jnp.transpose(weight_oihw, (2, 3, 1, 0))            # HWIO
    y = jax.lax.conv_general_dilated(
        x, w, window_strides=(1, 1), padding="SAME",
        dimension_numbers=("NHWC", "HWIO", "NHWC"),
        precision=jax.lax.Precision.HIGHEST) + bias[None, None, None, :]
    y = jnp.transpose(y, (0, 3, 1, 2))                       # NCHW
    return (y[:, :, ::2, ::2] + y[:, :, 1::2, ::2]
            + y[:, :, ::2, 1::2] + y[:, :, 1::2, 1::2]) / 4.0


if __name__ == "__main__":
    # Module config: ConvMeanPool(input_dim=4, output_dim=8, kernel_size=3)
    B, Cin, Cout, H, W, K = 2, 4, 8, 16, 16, 3

    key = jax.random.PRNGKey(0)
    kx, kw, kb = jax.random.split(key, 3)
    x = jax.random.normal(kx, (B, Cin, H, W), dtype=jnp.float32)
    # nn.Conv2d weight shape: (Cout, Cin, k, k), bias: (Cout,)
    weight = jax.random.normal(kw, (Cout, Cin, K, K), dtype=jnp.float32) * 0.1
    bias = jax.random.normal(kb, (Cout,), dtype=jnp.float32) * 0.1

    out = conv_mean_pool(x, weight, bias, K)
    out = jax.block_until_ready(out)

    ref = _reference(x, weight, bias)
    assert out.shape == (B, Cout, H // 2, W // 2), out.shape
    assert jnp.allclose(out, ref, atol=1e-4, rtol=1e-4), "mismatch vs reference"

    print("KERNEL_OK")
</pallas_src>

<mosaic_0001>
module attributes {stable_mosaic.version = 11 : i64} {
  func.func @fused_conv_pool_gemm_kernel(%arg0: i32, %arg1: i32, %arg2: i32, %arg3: memref<64x128xf32, #tpu.memory_space<vmem>>, %arg4: memref<128x128xf32, #tpu.memory_space<vmem>>, %arg5: memref<1x128xf32, #tpu.memory_space<vmem>>, %arg6: memref<64x128xf32, #tpu.memory_space<vmem>>, %arg7: memref<64x128xf32, #tpu.memory_space<vmem>>) attributes {dimension_semantics = [#tpu.dimension_semantics<parallel>, #tpu.dimension_semantics<parallel>, #tpu.dimension_semantics<arbitrary>], iteration_bounds = array<i64: 2, 1, 1>, scalar_prefetch = 0 : i64, scratch_operands = 1 : i64, tpu.core_type = #tpu.core_type<tc>, window_params = [{transform_indices = @transform_0, window_bounds = array<i64: 64, 128>}, {transform_indices = @transform_1, window_bounds = array<i64: 128, 128>}, {transform_indices = @transform_2, window_bounds = array<i64: 1, 128>}, {transform_indices = @transform_3, window_bounds = array<i64: 64, 128>}]} {
    %c0_i32 = arith.constant 0 : i32
    %0 = arith.cmpi eq, %arg2, %c0_i32 : i32
    %1 = arith.extui %0 : i1 to i32
    %c0_i32_0 = arith.constant 0 : i32
    %2 = arith.cmpi ne, %1, %c0_i32_0 : i32
    scf.if %2 {
      %cst_10 = arith.constant 0.000000e+00 : f32
      %12 = vector.broadcast %cst_10 : f32 to vector<64x128xf32>
      %c0_11 = arith.constant 0 : index
      %c0_12 = arith.constant 0 : index
      %13 = vector.load %arg7[%c0_11, %c0_12] : memref<64x128xf32, #tpu.memory_space<vmem>>, vector<64x128xf32>
      tpu.vector_store %arg7[%c0_11, %c0_12], %12 {strides = array<i32>} : memref<64x128xf32, #tpu.memory_space<vmem>>, vector<64x128xf32>,
    } else {
    }
    %c0 = arith.constant 0 : index
    %c0_1 = arith.constant 0 : index
    %3 = vector.load %arg7[%c0, %c0_1] : memref<64x128xf32, #tpu.memory_space<vmem>>, vector<64x128xf32>
    %c0_2 = arith.constant 0 : index
    %c0_3 = arith.constant 0 : index
    %4 = vector.load %arg3[%c0_2, %c0_3] : memref<64x128xf32, #tpu.memory_space<vmem>>, vector<64x128xf32>
    %c0_4 = arith.constant 0 : index
    %c0_5 = arith.constant 0 : index
    %5 = vector.load %arg4[%c0_4, %c0_5] : memref<128x128xf32, #tpu.memory_space<vmem>>, vector<128x128xf32>
    %cst = arith.constant dense<0.000000e+00> : vector<64x128xf32>
    %6 = tpu.matmul %4, %5, %cst {dimension_numbers = #tpu.dot_dimension_numbers<[1], [0], [0], [1], [0, 0, 1, 1], [], []>, precision = #tpu.contract_precision<fp32>} : vector<64x128xf32>, vector<128x128xf32>, vector<64x128xf32> -> vector<64x128xf32>
    %7 = arith.addf %3, %6 : vector<64x128xf32>
    %c0_6 = arith.constant 0 : index
    %c0_7 = arith.constant 0 : index
    %8 = vector.load %arg7[%c0_6, %c0_7] : memref<64x128xf32, #tpu.memory_space<vmem>>, vector<64x128xf32>
    tpu.vector_store %arg7[%c0_6, %c0_7], %7 {strides = array<i32>} : memref<64x128xf32, #tpu.memory_space<vmem>>, vector<64x128xf32>,
    %c0_i32_8 = arith.constant 0 : i32
    %9 = arith.cmpi eq, %arg2, %c0_i32_8 : i32
    %10 = arith.extui %9 : i1 to i32
    %c0_i32_9 = arith.constant 0 : i32
    %11 = arith.cmpi ne, %10, %c0_i32_9 : i32
    scf.if %11 {
      %c0_10 = arith.constant 0 : index
      %c0_11 = arith.constant 0 : index
      %12 = vector.load %arg7[%c0_10, %c0_11] : memref<64x128xf32, #tpu.memory_space<vmem>>, vector<64x128xf32>
      %c0_12 = arith.constant 0 : index
      %c0_13 = arith.constant 0 : index
      %13 = vector.load %arg5[%c0_12, %c0_13] : memref<1x128xf32, #tpu.memory_space<vmem>>, vector<1x128xf32>
      %14 = vector.broadcast %13 : vector<1x128xf32> to vector<64x128xf32>
      %15 = arith.addf %12, %14 : vector<64x128xf32>
      %c0_14 = arith.constant 0 : index
      %c0_15 = arith.constant 0 : index
      %16 = vector.load %arg6[%c0_14, %c0_15] : memref<64x128xf32, #tpu.memory_space<vmem>>, vector<64x128xf32>
      tpu.vector_store %arg6[%c0_14, %c0_15], %15 {strides = array<i32>} : memref<64x128xf32, #tpu.memory_space<vmem>>, vector<64x128xf32>,
    } else {
    }
    return
  }
  func.func @transform_0(%arg0: i32, %arg1: i32, %arg2: i32) -> (i32, i32) {
    %c0_i32 = arith.constant 0 : i32
    return %arg0, %arg2 : i32, i32
  }
  func.func @transform_1(%arg0: i32, %arg1: i32, %arg2: i32) -> (i32, i32) {
    %c0_i32 = arith.constant 0 : i32
    return %arg2, %arg1 : i32, i32
  }
  func.func @transform_2(%arg0: i32, %arg1: i32, %arg2: i32) -> (i32, i32) {
    %c0_i32 = arith.constant 0 : i32
    %c0_i32_0 = arith.constant 0 : i32
    return %c0_i32, %arg1 : i32, i32
  }
  func.func @transform_3(%arg0: i32, %arg1: i32, %arg2: i32) -> (i32, i32) {
    %c0_i32 = arith.constant 0 : i32
    return %arg0, %arg1 : i32, i32
  }
}

</mosaic_0001>

<bundles_post_ra>
// kernel: tpu_custom_call.1
= control target key start
LH: loop header
LB: loop body
LE: loop exit
PB: predicated region body
PF: predicated region fallthrough
CT: control target
= control target key end

     0   :  { %8 = vsyncpa [#allocation4], 0  ;;  %s2749_s0 = inlined_call_operand.hbm [shape: f32[128,128], index: 0, kind: input, shape index: {}]   ;;  %s2750_s1 = inlined_call_operand.hbm [shape: f32[128,128], index: 1, kind: input, shape index: {}]   ;;  %s2751_s2 = inlined_call_operand.vmem [shape: f32[1,128], index: 2, kind: input, shape index: {}]   ;;  %s2752_s3 = inlined_call_operand.hbm [shape: f32[128,128], index: 3, kind: output, shape index: {}]  }
   0x1   :  { %10 = vsyncpa [#allocation4 + $0x1], 0 }
   0x2   :  { %11 = vsyncpa [#allocation7], 0 }
   0x3   :  { %12 = vsyncpa [#allocation5], 0 }
   0x4   :  { %14 = vsyncpa [#allocation5 + $0x1], 0  ;;  %s2094_s12 = smov 0   ;;  %s2096_s13 = smov 0  }
   0x5   :  { %s2098_s14 = smov 0   ;;  %s2100_s15 = smov 0  }
   0x6   :  { %s2102_s16 = smov 0   ;;  %s2104_s17 = smov 0  }
   0x7 LB: > { %s1421_s18 = sadd.s32 4294967295, %s2065_s17   ;;  %s1422_s19 = sadd.s32 4294967294, %s2065_s17   ;;  %s2065_s17 = sphi %s2104_s17, %s20_s17   ;;  %s2061_s16 = sphi %s2102_s16, %s2788_s16   ;;  %s2057_s15 = sphi %s2100_s15, %s2787_s15   ;;  %s2053_s14 = sphi %s2098_s14, %s2786_s14   ;;  %s2049_s13 = sphi %s2096_s13, %s2785_s13   ;;  %s2045_s12 = sphi %s2094_s12, %s2784_s12  }
   0x8   : > { %p61_p0 = scmp.ne.s32.totalorder %s2049_s13, %s2045_s12  ;;  %p2128_p1 = scmp.eq.s32.totalorder %s1421_s18, 0 }
   0x9   : > { %p2132_p2 = scmp.eq.s32.totalorder %s1421_s18, 1  ;;  %p147_p3 = scmp.eq.s32.totalorder %s1422_s19, 1 }
   0xa   : > { %p2138_p4 = por %p2128_p1, %p61_p0  ;;  %p1423_p5 = scmp.ge.s32.totalorder %s2065_s17, 1 }
   0xb   : > { %p2143_p6 = por %p147_p3, %p61_p0  ;;  %p154_p7 = scmp.lt.s32.totalorder %s2065_s17, 3 }
   0xc   : > { %s2764_s22 = scalar_select %p2138_p4, 1, 0 }
   0xd   : > { %s2765_s23 = scalar_select %p2143_p6, 1, 0 }
   0xe   : > { %p2148_p8 = pnand %p1423_p5, %p154_p7  ;;  %s2067_s25 = smov [#allocation6]  }
   0xf   : > { %s170_s26 = sshll.u32 %s2067_s25, 4  ;;  %s39_s28 = sadd.s32 1, %s2061_s16  ;;  %s171_s26 = int_to_ptr.vmem [resolvable:$true] %s170_s26 }
  0x10   : > { %p1858_p9 = pneg %p2148_p8  ;;  %s1938_s29 = scalar_lea.vmem %s171_s26, 2048 }
  0x11   : > { %p1939_p13 = scmp.ne.s32.totalorder %s171_s26, %s1938_s29  ;;  %p1946_p5 = scmp.lt.s32.totalorder %s171_s26, %s171_s26 }
  0x12   : > { %p2157_p11 = pnand %p1858_p9, %p2128_p1  ;;  %p1947_p7 = scmp.lt.s32.totalorder %s1938_s29, %s1938_s29 }
  0x14   : > { %p1929_p12 = pneg %p2157_p11  ;;  %p1948_p6 = por %p1947_p7, %p1946_p5 }
  0x16   : > { %p1941_p0 = pnand %p1939_p13, %p1929_p12 }
  0x18   : > { %p1942_p3 = pneg %p1941_p0 }
  0x1a   : > { %p1949_p4 = pnand %p1948_p6, %p1942_p3 }
  0x1c   : > { %1952 = shalt.err (!%p1949_p4)
}
  0x1d   : > { %s2754_s30 = smov 128   ;;  %s2755_s4 = smov 8  }
  0x1e   : > { %1861 = dma.hbm_to_vmem [thread:$0]  (!%p2157_p11), %s2750_s1, 2048, %s171_s26, [#allocation7], %s2754_s30, %s2754_s30, %s2755_s4  }
  0x1f   : > { %p41_p4 = scmp.ge.s32.totalorder %s39_s28, 2  ;;  %s48_s7 = sadd.s32 1, %s2053_s14 }
  0x20   : > { %p55_p6 = scmp.ne.s32.totalorder %s2053_s14, %s2049_s13  ;;  %p56_p9 = scmp.eq.s32.totalorder %s2065_s17, 0 }
  0x21   : > { %s2790_s28 = smov (%p41_p4, %s39_s28), 0  ;;  %p1871_p0 = scmp.lt.s32.totalorder %s2065_s17, 2 }
  0x22   : > { %p2178_p12 = por %p56_p9, %p55_p6  ;;  %p2184_p13 = por %p2132_p2, %p55_p6 }
  0x23   : > { %s43_s10 = ssub.s32 %s2061_s16, %s2790_s28  ;;  %s190_s11 = sand.u32 1, %s2053_s14  }
  0x24   : > { %p46_p11 = scmp.eq.s32.totalorder %s43_s10, 0  ;;  %s1427_s18 = sshll.u32 %s190_s11, 6 }
  0x25   : > { %s1440_s25 = sshll.u32 %s2061_s16, 10  ;;  %s194_s5 = scalar_lea.vmem [#allocation3], %s1427_s18 }
  0x26   : > { %s2193_s19 = scalar_select %p46_p11, %s2053_s14, %s48_s7  }
  0x27   : > { %s201_s29 = scalar_lea.hbm %s2749_s0, %s1440_s25  ;;  %s202_s6 = sshll.u32 %s194_s5, 4  ;;  %s203_s6 = int_to_ptr.vmem [resolvable:$true] %s202_s6 }
  0x28   : > { %p2201_p2 = pnand %p1871_p0, %p2178_p12  ;;  %s191_s30 = scalar_lea.sflag [#allocation4], %s190_s11 }
  0x29   : > { %s1966_s10 = scalar_lea.vmem %s203_s6, 1024  ;;  %s2070_s7 = smov [#allocation3]  }
  0x2a   : > { %p1955_p3 = pneg %p2201_p2  ;;  %p1967_p5 = scmp.ne.s32.totalorder %s203_s6, %s1966_s10 }
  0x2b   : > { %s1971_s4 = sshll.u32 %s2070_s7, 4  ;;  %s1972_s4 = int_to_ptr.vmem [resolvable:$false] %s1971_s4 }
  0x2c   : > { %p1969_p7 = pnand %p1967_p5, %p1955_p3  ;;  %s1973_s25 = scalar_lea.vmem %s1972_s4, 2048 }
  0x2d   : > { %p1974_p6 = scmp.lt.s32.totalorder %s203_s6, %s1972_s4  ;;  %p1975_p9 = scmp.lt.s32.totalorder %s1973_s25, %s1966_s10 }
  0x2e   : > { %p1970_p4 = pneg %p1969_p7 }
  0x2f   : > { %p1976_p11 = por %p1975_p9, %p1974_p6 }
  0x31   : > { %p1977_p10 = pnand %p1976_p11, %p1970_p4 }
  0x33   : > { %1980 = shalt.err (!%p1977_p10)
}
  0x34   : > { %s2771_s8 = smov 8   ;;  %s2772_s18 = smov 128  }
  0x35   : > { %1865 = dma.hbm_to_vmem [thread:$0]  (!%p2201_p2), %s201_s29, 1024, %s203_s6, %s191_s30, %s2772_s18, %s2772_s18, %s2771_s8  }
  0x36   : > { %214 = sbr.rel (%p2148_p8) target bundleno = 414 (0x19e), region = 32 }
  0x3b   : > { %s2215_s11 = sand.u32 1, %s2049_s13   ;;  %p2773_p10 = scmp.ne.s32.totalorder %s2764_s22, 0 }
  0x3c   : > { %s1431_s4 = sshll.u32 %s2215_s11, 6  ;;  %s217_s26 = scalar_lea.sflag [#allocation4], %s2215_s11 }
  0x3d   : > { %s2221_s27 = scalar_lea.vmem [#allocation3], %s1431_s4 }
  0x3e   : > { %2032 = dma.done.wait (%p2773_p10), %s217_s26, 1024  }
  0x3f   : > { %2034 = vsyncadd (%p2773_p10), %s217_s26, 4294966272 }
  0x40   : > { %2036 = dma.done.wait (%p2128_p1), [#allocation7], 2048  }
  0x41   : > { %2038 = vsyncadd (%p2128_p1), [#allocation7], 4294965248  ;;  %v299_v0 = vld [vmem:[#allocation6 + $0x78] sm:$0xff]  ;;  %v298_v1 = vld [vmem:[#allocation6 + $0x70] sm:$0xff]  ;;  %s2684_s24 = scalar_lea.vmem [#allocation8], %s1431_s4  ;;  %s1441_s29 = sshll.u32 %s2057_s15, 10 }
  0x42   : > { %v297_v2 = vld [vmem:[#allocation6 + $0x68] sm:$0xff]  ;;  %v2231_v3 = vand.u32 4294901760, %v299_v0  ;;  %v2233_v4 = vand.u32 4294901760, %v298_v1  ;;  %v296_v6 = vld [vmem:[#allocation6 + $0x60] sm:$0xff]  ;;  %v295_v7 = vld [vmem:[#allocation6 + $0x58] sm:$0xff]  ;;  %s1307_s30 = sshll.u32 %s2684_s24, 4  ;;  %s2699_s21 = scalar_lea.hbm %s2752_s3, %s1441_s29  ;;  %s2693_s30 = int_to_ptr.vmem [resolvable:$true] %s1307_s30 }
  0x43   : > { %v2235_v5 = vand.u32 4294901760, %v297_v2  ;;  %v294_v8 = vld [vmem:[#allocation6 + $0x50] sm:$0xff]  ;;  %v2237_v9 = vand.u32 4294901760, %v296_v6  ;;  %v2239_v10 = vand.u32 4294901760, %v295_v7  ;;  %v293_v12 = vld [vmem:[#allocation6 + $0x48] sm:$0xff]  ;;  %v292_v13 = vld [vmem:[#allocation6 + $0x40] sm:$0xff] }
  0x44   : > { %v2241_v11 = vand.u32 4294901760, %v294_v8  ;;  %1586 = vmatprep.subr.mxu0 %v2231_v3  ;;  %v2245_v14 = vsub.f32 %v299_v0, %v2231_v3  ;;  %v2248_v15 = vsub.f32 %v298_v1, %v2233_v4  ;;  %v2250_v16 = vand.u32 4294901760, %v293_v12  ;;  %v291_v18 = vld [vmem:[#allocation6 + $0x38] sm:$0xff]  ;;  %v290_v25 = vld [vmem:[#allocation6 + $0x30] sm:$0xff]  ;;  %v289_v35 = vld [vmem:[#allocation6 + $0x28] sm:$0xff]  ;;  %s1293_s10 = scalar_lea.sflag [#allocation5], %s2215_s11 }
  0x45   : > { %v2253_v17 = vsub.f32 %v297_v2, %v2235_v5  ;;  %1587 = vmatpush3.msra.mxu0 %v2231_v3  ;;  %v2257_v19 = vsub.f32 %v296_v6, %v2237_v9  ;;  %v2260_v20 = vsub.f32 %v295_v7, %v2239_v10  ;;  %v2272_v24 = vand.u32 4294901760, %v292_v13  ;;  %v288_v40 = vld [vmem:[#allocation6 + $0x20] sm:$0xff]  ;;  %v287_v48 = vld [vmem:[#allocation6 + $0x18] sm:$0xff]  ;;  %v277_v54 = vld [vmem:[%s2221_s27 + $0x8] sm:$0xff]  ;;  %s1981_s7 = scalar_lea.vmem %s2693_s30, 1024  ;;  %s2071_s15 = smov [#allocation8]  }
  0x46   : > { %1588 = vmatprep.subr.mxu0 %v2233_v4  ;;  %v2264_v21 = vand.u32 4294901760, %v2245_v14  ;;  %v2267_v22 = vand.u32 4294901760, %v2248_v15  ;;  %v2278_v27 = vand.u32 4294901760, %v291_v18  ;;  %v2284_v29 = vsub.f32 %v294_v8, %v2241_v11  ;;  %v276_v49 = vld [vmem:[%s2221_s27] sm:$0xff]  ;;  %v286_v59 = vld [vmem:[#allocation6 + $0x10] sm:$0xff]  ;;  %v285_v2 = vld [vmem:[#allocation6 + $0x8] sm:$0xff]  ;;  %p1982_p1 = scmp.ne.s32.totalorder %s2693_s30, %s1981_s7 }
  0x47   : > { %v2270_v23 = vand.u32 4294901760, %v2253_v17  ;;  %1589 = vmatpush3.msra.mxu0 %v2233_v4  ;;  %v2276_v26 = vand.u32 4294901760, %v2257_v19  ;;  %v2281_v28 = vand.u32 4294901760, %v2260_v20  ;;  %v2294_v33 = vsub.f32 %v293_v12, %v2250_v16  ;;  %s1985_s25 = sshll.u32 %s2071_s15, 4  ;;  %s1986_s25 = int_to_ptr.vmem [resolvable:$false] %s1985_s25 }
  0x48   : > { %1590 = vmatprep.subr.mxu0 %v2235_v5  ;;  %v465_v30 = vsub.f32 %v2245_v14, %v2264_v21  ;;  %v472_v31 = vsub.f32 %v2248_v15, %v2267_v22  ;;  %v2297_v34 = vand.u32 4294901760, %v290_v25  ;;  %v2303_v39 = vand.u32 4294901760, %v2284_v29  ;;  %p1983_p8 = pnand %p1982_p1, %p2184_p13  ;;  %s1987_s8 = scalar_lea.vmem %s1986_s25, 2048 }
  0x49   : > { %v479_v32 = vsub.f32 %v2253_v17, %v2270_v23  ;;  %1591 = vmatpush3.msra.mxu0 %v2235_v5  ;;  %v486_v38 = vsub.f32 %v2257_v19, %v2276_v26  ;;  %v493_v41 = vsub.f32 %v2260_v20, %v2281_v28  ;;  %v2309_v42 = vand.u32 4294901760, %v2294_v33  ;;  %p1988_p0 = scmp.lt.s32.totalorder %s2693_s30, %s1986_s25  ;;  %p1989_p2 = scmp.lt.s32.totalorder %s1987_s8, %s1981_s7 }
  0x4a   : > { %1592 = vmatprep.subr.mxu0 %v2237_v9  ;;  %v466_v36 = vand.u32 4294901760, %v465_v30  ;;  %v473_v37 = vand.u32 4294901760, %v472_v31  ;;  %v2312_v43 = vsub.f32 %v292_v13, %v2272_v24  ;;  %v2315_v45 = vand.u32 4294901760, %v289_v35  ;;  %p1984_p12 = pneg %p1983_p8 }
  0x4b   : > { %1593 = vmatpush3.msra.mxu0 %v2237_v9  ;;  %v480_v44 = vand.u32 4294901760, %v479_v32  ;;  %v2318_v46 = vsub.f32 %v291_v18, %v2278_v27  ;;  %v2321_v47 = vand.u32 4294901760, %v288_v40  ;;  %v487_v50 = vand.u32 4294901760, %v486_v38  ;;  %v284_v18 = vld [vmem:[#allocation6] sm:$0xff]  ;;  %p1990_p3 = por %p1989_p2, %p1988_p0 }
  0x4c   : > { %1594 = vmatprep.subr.mxu0 %v2239_v10  ;;  %1630 = vmatprep.subr.mxu1 %v466_v36  ;;  %v500_v51 = vsub.f32 %v2284_v29, %v2303_v39  ;;  %v2328_v52 = vand.u32 4294901760, %v2312_v43  ;;  %v2331_v53 = vsub.f32 %v290_v25, %v2297_v34  ;;  %v494_v55 = vand.u32 4294901760, %v493_v41 }
  0x4d   : > { %1595 = vmatpush3.msra.mxu0 %v2239_v10  ;;  %1631 = vmatpush3.msra.mxu1 %v466_v36  ;;  %v507_v56 = vsub.f32 %v2294_v33, %v2309_v42  ;;  %v2338_v57 = vand.u32 4294901760, %v287_v48  ;;  %v2341_v58 = vand.u32 4294901760, %v2318_v46  ;;  %v2344_v60 = vsub.f32 %v289_v35, %v2315_v45  ;;  %p1991_p5 = pnand %p1990_p3, %p1984_p12 }
  0x4e   : > { %1596 = vmatprep.subr.mxu0 %v2241_v11  ;;  %1632 = vmatprep.subr.mxu1 %v473_v37  ;;  %v2346_v61 = vand.u32 4294901760, %v276_v49  ;;  %v2349_v62 = vand.u32 4294901760, %v277_v54  ;;  %v501_v63 = vand.u32 4294901760, %v500_v51  ;;  %v514_v0 = vsub.f32 %v2312_v43, %v2328_v52 }
  0x4f   : > { %1597 = vmatpush3.msra.mxu0 %v2241_v11  ;;  %1633 = vmatpush3.msra.mxu1 %v473_v37  ;;  %v2355_v1 = vand.u32 4294901760, %v2331_v53  ;;  %v2358_v6 = vsub.f32 %v288_v40, %v2321_v47  ;;  %v508_v7 = vand.u32 4294901760, %v507_v56  ;;  %v2361_v8 = vand.u32 4294901760, %v286_v59 }
  0x50   : > { %1598 = vmatprep.subr.mxu0 %v2250_v16  ;;  %1634 = vmatprep.subr.mxu1 %v480_v44  ;;  %v521_v12 = vsub.f32 %v2318_v46, %v2341_v58  ;;  %v2367_v13 = vand.u32 4294901760, %v2344_v60  ;;  %v2370_v25 = vsub.f32 %v276_v49, %v2346_v61  ;;  %v2373_v30 = vsub.f32 %v287_v48, %v2338_v57 }
  0x51   : > { %1599 = vmatpush3.msra.mxu0 %v2250_v16  ;;  %1635 = vmatpush3.msra.mxu1 %v480_v44  ;;  %v2376_v31 = vand.u32 4294901760, %v285_v2  ;;  %v2379_v32 = vsub.f32 %v277_v54, %v2349_v62  ;;  %v515_v35 = vand.u32 4294901760, %v514_v0  ;;  %v528_v36 = vsub.f32 %v2331_v53, %v2355_v1 }
  0x52   : > { %1600 = vmatprep.subr.mxu0 %v2272_v24  ;;  %1636 = vmatprep.subr.mxu1 %v487_v50  ;;  %v2385_v37 = vand.u32 4294901760, %v2358_v6  ;;  %v2388_v38 = vand.u32 4294901760, %v284_v18  ;;  %v2391_v40 = vsub.f32 %v286_v59, %v2361_v8  ;;  %v522_v41 = vand.u32 4294901760, %v521_v12 }
  0x53   : > { %1601 = vmatpush3.msra.mxu0 %v2272_v24  ;;  %1637 = vmatpush3.msra.mxu1 %v487_v50  ;;  %v535_v44 = vsub.f32 %v2344_v60, %v2367_v13  ;;  %v2757_v48 = vand.u32 4294901760, %v2370_v25  ;;  %v2398_v49 = vand.u32 4294901760, %v2373_v30  ;;  %v2756_v50 = vand.u32 4294901760, %v2379_v32 }
  0x54   : > { %1602 = vmatprep.subr.mxu0 %v2278_v27  ;;  %1638 = vmatprep.subr.mxu1 %v494_v55  ;;  %v2403_v51 = vsub.f32 %v285_v2, %v2376_v31  ;;  %v529_v54 = vand.u32 4294901760, %v528_v36  ;;  %v2410_v56 = vand.u32 4294901760, %v2391_v40  ;;  %v2413_v59 = vsub.f32 %v284_v18, %v2388_v38 }
  0x55   : > { %1603 = vmatpush3.msra.mxu0 %v2278_v27  ;;  %1639 = vmatpush3.msra.mxu1 %v494_v55  ;;  %v542_v55 = vsub.f32 %v2358_v6, %v2385_v37  ;;  %v384_v0 = vsub.f32 %v2370_v25, %v2757_v48  ;;  %v549_v2 = vsub.f32 %v2373_v30, %v2398_v49 }
  0x56   : > { %1604 = vmatprep.subr.mxu0 %v2297_v34  ;;  %1640 = vmatprep.subr.mxu1 %v501_v63  ;;  %v2426_v12 = vand.u32 4294901760, %v2403_v51  ;;  %v2433_v36 = vand.u32 4294901760, %v2413_v59 }
  0x57   : > { %1605 = vmatpush3.msra.mxu0 %v2297_v34  ;;  %1641 = vmatpush3.msra.mxu1 %v501_v63  ;;  %v536_v63 = vand.u32 4294901760, %v535_v44  ;;  %v543_v18 = vand.u32 4294901760, %v542_v55  ;;  %v550_v44 = vand.u32 4294901760, %v549_v2  ;;  %v279_v2 = vld [vmem:[%s2221_s27 + $0x18] sm:$0xff] }
  0x58   : > { %1606 = vmatprep.subr.mxu0 %v2315_v45  ;;  %1642 = vmatprep.subr.mxu1 %v508_v7  ;;  %2774 = vst [vmem:[#allocation12_spill] sm:$0xff] %v2426_v12  ;;  %v563_v55 = vsub.f32 %v2403_v51, %v2426_v12  ;;  %v2449_v12 = vand.u32 4294901760, %v279_v2 }
  0x59   : > { %1607 = vmatpush3.msra.mxu0 %v2315_v45  ;;  %1643 = vmatpush3.msra.mxu1 %v508_v7  ;;  %v394_v7 = vsub.f32 %v2379_v32, %v2756_v50 }
  0x5a   : > { %1608 = vmatprep.subr.mxu0 %v2321_v47  ;;  %1644 = vmatprep.subr.mxu1 %v515_v35 }
  0x5b   : > { %1609 = vmatpush3.msra.mxu0 %v2321_v47  ;;  %1645 = vmatpush3.msra.mxu1 %v515_v35  ;;  %v556_v35 = vsub.f32 %v2391_v40, %v2410_v56  ;;  %v395_v50 = vand.u32 4294901760, %v394_v7 }
  0x5c   : > { %1610 = vmatprep.subr.mxu0 %v2338_v57  ;;  %1646 = vmatprep.subr.mxu1 %v522_v41 }
  0x5d   : > { %1611 = vmatpush3.msra.mxu0 %v2338_v57  ;;  %1647 = vmatpush3.msra.mxu1 %v522_v41  ;;  %v385_v41 = vand.u32 4294901760, %v384_v0  ;;  %v557_v48 = vand.u32 4294901760, %v556_v35  ;;  %v570_v0 = vsub.f32 %v2413_v59, %v2433_v36  ;;  %v280_v35 = vld [vmem:[%s2221_s27 + $0x20] sm:$0xff] }
  0x5e   : > { %1612 = vmatprep.subr.mxu0 %v2361_v8  ;;  %1648 = vmatprep.subr.mxu1 %v529_v54 }
  0x5f   : > { %1613 = vmatpush3.msra.mxu0 %v2361_v8  ;;  %1649 = vmatpush3.msra.mxu1 %v529_v54  ;;  %v278_v54 = vld [vmem:[%s2221_s27 + $0x10] sm:$0xff] }
  0x60   : > { %1614 = vmatprep.subr.mxu0 %v2376_v31  ;;  %1650 = vmatprep.subr.mxu1 %v536_v63  ;;  %v2446_v7 = vand.u32 4294901760, %v278_v54 }
  0x61   : > { %1615 = vmatpush3.msra.mxu0 %v2376_v31  ;;  %1651 = vmatpush3.msra.mxu1 %v536_v63  ;;  %v564_v63 = vand.u32 4294901760, %v563_v55 }
  0x62   : > { %1616 = vmatprep.subr.mxu0 %v2388_v38  ;;  %1652 = vmatprep.subr.mxu1 %v543_v18 }
  0x63   : > { %1617 = vmatpush3.msra.mxu0 %v2388_v38  ;;  %1653 = vmatpush3.msra.mxu1 %v543_v18  ;;  %v571_v18 = vand.u32 4294901760, %v570_v0  ;;  %v283_v0 = vld [vmem:[%s2221_s27 + $0x38] sm:$0xff] }
  0x64   : > { %1618 = vmatprep.mubr.f32.mxu0 %v385_v41  ;;  %1654 = vmatprep.subr.mxu1 %v550_v44  ;;  %v281_v41 = vld [vmem:[%s2221_s27 + $0x28] sm:$0xff] }
  0x65   : > { %1674 = vmatprep.subr.mxu0 %v2245_v14  ;;  %1619 = vmatmul.mubr.f32.vlgmr.msra.gmra.mxu0 %v395_v50  ;;  %v2457_v50 = vsub.f32 %v278_v54, %v2446_v7 }
  0x66   : > { %1655 = vmatpush3.msra.mxu1 %v550_v44  ;;  %1675 = vmatpush3.msra.mxu0 %v2245_v14  ;;  %v2461_v14 = vsub.f32 %v279_v2, %v2449_v12  ;;  %v2463_v44 = vand.u32 4294901760, %v280_v35 }
  0x67   : > { %1656 = vmatprep.subr.mxu1 %v557_v48  ;;  %1676 = vmatprep.subr.mxu0 %v2248_v15 }
  0x68   : > { %1657 = vmatpush3.msra.mxu1 %v557_v48  ;;  %1677 = vmatpush3.msra.mxu0 %v2248_v15  ;;  %v2466_v15 = vand.u32 4294901760, %v281_v41  ;;  %v282_v48 = vld [vmem:[%s2221_s27 + $0x30] sm:$0xff]  ;;  %v2760_v55 = vand.u32 4294901760, %v2461_v14  ;;  %v2477_v54 = vsub.f32 %v280_v35, %v2463_v44 }
  0x69   : > { %1658 = vmatprep.subr.mxu1 %v564_v63  ;;  %1678 = vmatprep.subr.mxu0 %v2253_v17  ;;  %v2487_v2 = vand.u32 4294901760, %v282_v48 }
  0x6a   : > { %1659 = vmatpush3.msra.mxu1 %v564_v63  ;;  %1679 = vmatpush3.msra.mxu0 %v2253_v17  ;;  %v2761_v17 = vand.u32 4294901760, %v2457_v50  ;;  %v423_v35 = vand.u32 4294901760, %v2477_v54 }
  0x6b   : > { %1660 = vmatprep.subr.mxu1 %v571_v18  ;;  %1680 = vmatprep.subr.mxu0 %v2257_v19 }
  0x6c   : > { %1661 = vmatpush3.msra.mxu1 %v571_v18  ;;  %1662 = vmatprep.mubr.f32.mxu1 %v2346_v61  ;;  %v404_v63 = vsub.f32 %v2457_v50, %v2761_v17  ;;  %v414_v18 = vsub.f32 %v2461_v14, %v2760_v55 }
  0x6d   : > { %1681 = vmatpush3.msra.mxu0 %v2257_v19  ;;  %1663 = vmatmul.mubr.f32.vlgmr.msra.gmra.mxu1 %v2349_v62  ;;  %v2483_v19 = vsub.f32 %v281_v41, %v2466_v15  ;;  %v2508_v41 = vsub.f32 %v282_v48, %v2487_v2 }
  0x6e   : > { %1682 = vmatprep.subr.mxu0 %v2260_v20  ;;  %1718 = vmatprep.subr.mxu1 %v2231_v3  ;;  %v405_v55 = vand.u32 4294901760, %v404_v63 }
  0x6f   : > { %1683 = vmatpush3.msra.mxu0 %v2260_v20  ;;  %1719 = vmatpush3.msra.mxu1 %v2231_v3  ;;  %v2494_v20 = vand.u32 4294901760, %v283_v0 }
  0x70   : > { %1684 = vmatprep.subr.mxu0 %v2284_v29  ;;  %1720 = vmatprep.subr.mxu1 %v2233_v4 }
  0x71   : > { %1685 = vmatpush3.msra.mxu0 %v2284_v29  ;;  %1721 = vmatpush3.msra.mxu1 %v2233_v4  ;;  %v2513_v17 = vsub.f32 %v283_v0, %v2494_v20  ;;  %v424_v29 = vsub.f32 %v2477_v54, %v423_v35  ;;  %v443_v0 = vand.u32 4294901760, %v2508_v41 }
  0x72   : > { %1686 = vmatprep.subr.mxu0 %v2294_v33  ;;  %1722 = vmatprep.subr.mxu1 %v2235_v5 }
  0x73   : > { %1687 = vmatpush3.msra.mxu0 %v2294_v33  ;;  %1723 = vmatpush3.msra.mxu1 %v2235_v5  ;;  %v415_v33 = vand.u32 4294901760, %v414_v18  ;;  %v453_v63 = vand.u32 4294901760, %v2513_v17 }
  0x74   : > { %1688 = vmatprep.subr.mxu0 %v2312_v43  ;;  %1724 = vmatprep.subr.mxu1 %v2237_v9 }
  0x75   : > { %1689 = vmatpush3.msra.mxu0 %v2312_v43  ;;  %1725 = vmatpush3.msra.mxu1 %v2237_v9  ;;  %v2775_v43 = vand.u32 4294901760, %v2483_v19 }
  0x76   : > { %1690 = vmatprep.subr.mxu0 %v2318_v46  ;;  %1726 = vmatprep.subr.mxu1 %v2239_v10 }
  0x77   : > { %1691 = vmatpush3.msra.mxu0 %v2318_v46  ;;  %1727 = vmatpush3.msra.mxu1 %v2239_v10  ;;  %v434_v48 = vsub.f32 %v2483_v19, %v2775_v43  ;;  %v425_v46 = vand.u32 4294901760, %v424_v29 }
  0x78   : > { %1692 = vmatprep.subr.mxu0 %v2331_v53  ;;  %1728 = vmatprep.subr.mxu1 %v2241_v11 }
  0x79   : > { %1621 = vmatprep.mubr.f32.mxu0 %v405_v55  ;;  %1693 = vmatpush3.msra.mxu0 %v2331_v53  ;;  %v435_v18 = vand.u32 4294901760, %v434_v48  ;;  %v444_v55 = vsub.f32 %v2508_v41, %v443_v0  ;;  %v454_v53 = vsub.f32 %v2513_v17, %v453_v63  ;;  %v1434_v48 = vld [vmem:[%s2751_s2] ss:$0 sm:$0xff] }
  0x7a   : > { %1729 = vmatpush3.msra.mxu1 %v2241_v11  ;;  %1622 = vmatmul.mubr.f32.gmra.mxu0 %v415_v33 }
  0x7b   : > { %1694 = vmatprep.subr.mxu0 %v2344_v60  ;;  %1730 = vmatprep.subr.mxu1 %v2250_v16  ;;  %v455_v29 = vand.u32 4294901760, %v454_v53 }
  0x7c   : > { %1695 = vmatpush3.msra.mxu0 %v2344_v60  ;;  %1731 = vmatpush3.msra.mxu1 %v2250_v16  ;;  %v445_v60 = vand.u32 4294901760, %v444_v55 }
  0x7d   : > { %1696 = vmatprep.subr.mxu0 %v2358_v6  ;;  %1732 = vmatprep.subr.mxu1 %v2272_v24 }
  0x7e   : > { %1624 = vmatprep.mubr.f32.mxu0 %v425_v46  ;;  %1697 = vmatpush3.msra.mxu0 %v2358_v6 }
  0x7f   : > { %1733 = vmatpush3.msra.mxu1 %v2272_v24  ;;  %1625 = vmatmul.mubr.f32.gmra.mxu0 %v435_v18 }
  0x80   : > { %1665 = vmatprep.mubr.f32.mxu1 %v2446_v7  ;;  %1698 = vmatprep.subr.mxu0 %v2373_v30 }
  0x81   : > { %1734 = vmatprep.subr.mxu1 %v2278_v27  ;;  %1666 = vmatmul.mubr.f32.gmra.mxu1 %v2449_v12 }
  0x82   : > { %1699 = vmatpush3.msra.mxu0 %v2373_v30  ;;  %1735 = vmatpush3.msra.mxu1 %v2278_v27 }
  0x83   : > { %1700 = vmatprep.subr.mxu0 %v2391_v40  ;;  %1736 = vmatprep.subr.mxu1 %v2297_v34 }
  0x84   : > { %1627 = vmatprep.mubr.f32.mxu0 %v445_v60  ;;  %1701 = vmatpush3.msra.mxu0 %v2391_v40 }
  0x85   : > { %1737 = vmatpush3.msra.mxu1 %v2297_v34  ;;  %1628 = vmatmul.mubr.f32.gmra.mxu0 %v455_v29 }
  0x86   : > { %1668 = vmatprep.mubr.f32.mxu1 %v2463_v44  ;;  %1702 = vmatprep.subr.mxu0 %v2403_v51 }
  0x87   : > { %1738 = vmatprep.subr.mxu1 %v2315_v45  ;;  %1669 = vmatmul.mubr.f32.gmra.mxu1 %v2466_v15 }
  0x88   : > { %1703 = vmatpush3.msra.mxu0 %v2403_v51  ;;  %1739 = vmatpush3.msra.mxu1 %v2315_v45 }
  0x89   : > { %1704 = vmatprep.subr.mxu0 %v2413_v59  ;;  %1740 = vmatprep.subr.mxu1 %v2321_v47 }
  0x8a   : > { %1705 = vmatpush3.msra.mxu0 %v2413_v59  ;;  %1706 = vmatprep.mubr.f32.mxu0 %v2370_v25 }
  0x8b   : > { %1741 = vmatpush3.msra.mxu1 %v2321_v47  ;;  %1671 = vmatprep.mubr.f32.mxu1 %v2487_v2 }
  0x8c   : > { %1707 = vmatmul.mubr.f32.vlgmr.msra.gmra.mxu0 %v2379_v32  ;;  %1742 = vmatprep.subr.mxu1 %v2338_v57 }
  0x8d   : > { %1762 = vmatprep.subr.mxu0 %v2264_v21  ;;  %1672 = vmatmul.mubr.f32.gmra.mxu1 %v2494_v20 }
  0x8e   : > { %1743 = vmatpush3.msra.mxu1 %v2338_v57  ;;  %1763 = vmatpush3.msra.mxu0 %v2264_v21  ;;  %v2776_v21 = vand.u32 4294901760, %v2370_v25 }
  0x8f   : > { %1744 = vmatprep.subr.mxu1 %v2361_v8  ;;  %1764 = vmatprep.subr.mxu0 %v2267_v22 }
  0x90   : > { %1709 = vmatprep.mubr.f32.mxu0 %v2457_v50  ;;  %1745 = vmatpush3.msra.mxu1 %v2361_v8 }
  0x91   : > { %1765 = vmatpush3.msra.mxu0 %v2267_v22  ;;  %1746 = vmatprep.subr.mxu1 %v2376_v31  ;;  %v2777_v22 = vand.u32 4294901760, %v2379_v32 }
  0x92   : > { %1710 = vmatmul.mubr.f32.gmra.mxu0 %v2461_v14  ;;  %1766 = vmatprep.subr.mxu0 %v2270_v23 }
  0x93   : > { %1747 = vmatpush3.msra.mxu1 %v2376_v31  ;;  %1767 = vmatpush3.msra.mxu0 %v2270_v23  ;;  %v2778_v23 = vand.u32 4294901760, %v2457_v50 }
  0x94   : > { %1748 = vmatprep.subr.mxu1 %v2388_v38  ;;  %1768 = vmatprep.subr.mxu0 %v2276_v26 }
  0x95   : > { %1712 = vmatprep.mubr.f32.mxu0 %v2477_v54  ;;  %1749 = vmatpush3.msra.mxu1 %v2388_v38 }
  0x96   : > { %1750 = vmatprep.mubr.f32.mxu1 %v2776_v21  ;;  %1769 = vmatpush3.msra.mxu0 %v2276_v26  ;;  %v2779_v26 = vand.u32 4294901760, %v2461_v14 }
  0x97   : > { %1713 = vmatmul.mubr.f32.gmra.mxu0 %v2483_v19  ;;  %1751 = vmatmul.mubr.f32.vlgmr.msra.gmra.mxu1 %v2777_v22 }
  0x98   : > { %1770 = vmatprep.subr.mxu0 %v2281_v28  ;;  %1806 = vmatprep.subr.mxu1 %v2231_v3 }
  0x99   : > { %1771 = vmatpush3.msra.mxu0 %v2281_v28  ;;  %1807 = vmatpush3.msra.mxu1 %v2231_v3  ;;  %v2780_v3 = vmov %v2775_v43 }
  0x9a   : > { %1772 = vmatprep.subr.mxu0 %v2303_v39  ;;  %1808 = vmatprep.subr.mxu1 %v2233_v4 }
  0x9b   : > { %1715 = vmatprep.mubr.f32.mxu0 %v2508_v41  ;;  %1753 = vmatprep.mubr.f32.mxu1 %v2778_v23 }
  0x9c   : > { %1773 = vmatpush3.msra.mxu0 %v2303_v39  ;;  %1809 = vmatpush3.msra.mxu1 %v2233_v4  ;;  %v2781_v4 = vld [vmem:[#allocation12_spill] sm:$0xff] }
  0x9d   : > { %1716 = vmatmul.mubr.f32.gmra.mxu0 %v2513_v17  ;;  %1754 = vmatmul.mubr.f32.gmra.mxu1 %v2779_v26 }
  0x9e   : > { %1774 = vmatprep.subr.mxu0 %v2309_v42  ;;  %1810 = vmatprep.subr.mxu1 %v2235_v5 }
  0x9f   : > { %1775 = vmatpush3.msra.mxu0 %v2309_v42  ;;  %1811 = vmatpush3.msra.mxu1 %v2235_v5 }
  0xa0   : > { %1776 = vmatprep.subr.mxu0 %v2328_v52  ;;  %1812 = vmatprep.subr.mxu1 %v2237_v9 }
  0xa1   : > { %1756 = vmatprep.mubr.f32.mxu1 %v423_v35  ;;  %1777 = vmatpush3.msra.mxu0 %v2328_v52 }
  0xa2   : > { %1813 = vmatpush3.msra.mxu1 %v2237_v9  ;;  %1778 = vmatprep.subr.mxu0 %v2341_v58 }
  0xa3   : > { %1757 = vmatmul.mubr.f32.gmra.mxu1 %v2780_v3  ;;  %1814 = vmatprep.subr.mxu1 %v2239_v10 }
  0xa4   : > { %1779 = vmatpush3.msra.mxu0 %v2341_v58  ;;  %1815 = vmatpush3.msra.mxu1 %v2239_v10 }
  0xa5   : > { %1780 = vmatprep.subr.mxu0 %v2355_v1  ;;  %1816 = vmatprep.subr.mxu1 %v2241_v11 }
  0xa6   : > { %1759 = vmatprep.mubr.f32.mxu1 %v443_v0  ;;  %1781 = vmatpush3.msra.mxu0 %v2355_v1 }
  0xa7   : > { %1817 = vmatpush3.msra.mxu1 %v2241_v11  ;;  %1782 = vmatprep.subr.mxu0 %v2367_v13 }
  0xa8   : > { %1760 = vmatmul.mubr.f32.gmra.mxu1 %v453_v63  ;;  %1818 = vmatprep.subr.mxu1 %v2250_v16 }
  0xa9   : > { %1783 = vmatpush3.msra.mxu0 %v2367_v13  ;;  %1819 = vmatpush3.msra.mxu1 %v2250_v16 }
  0xaa   : > { %1784 = vmatprep.subr.mxu0 %v2385_v37  ;;  %1820 = vmatprep.subr.mxu1 %v2272_v24 }
  0xab   : > { %1785 = vmatpush3.msra.mxu0 %v2385_v37  ;;  %1821 = vmatpush3.msra.mxu1 %v2272_v24 }
  0xac   : > { %1786 = vmatprep.subr.mxu0 %v2398_v49  ;;  %1822 = vmatprep.subr.mxu1 %v2278_v27 }
  0xad   : > { %1787 = vmatpush3.msra.mxu0 %v2398_v49  ;;  %1823 = vmatpush3.msra.mxu1 %v2278_v27 }
  0xae   : > { %1788 = vmatprep.subr.mxu0 %v2410_v56  ;;  %1824 = vmatprep.subr.mxu1 %v2297_v34 }
  0xaf   : > { %1789 = vmatpush3.msra.mxu0 %v2410_v56  ;;  %1825 = vmatpush3.msra.mxu1 %v2297_v34 }
  0xb0   : > { %1790 = vmatprep.subr.mxu0 %v2781_v4  ;;  %1826 = vmatprep.subr.mxu1 %v2315_v45 }
  0xb1   : > { %1791 = vmatpush3.msra.mxu0 %v2781_v4  ;;  %1827 = vmatpush3.msra.mxu1 %v2315_v45 }
  0xb2   : > { %1792 = vmatprep.subr.mxu0 %v2433_v36  ;;  %1828 = vmatprep.subr.mxu1 %v2321_v47 }
  0xb3   : > { %1793 = vmatpush3.msra.mxu0 %v2433_v36  ;;  %1794 = vmatprep.mubr.f32.mxu0 %v2346_v61 }
  0xb4   : > { %1829 = vmatpush3.msra.mxu1 %v2321_v47  ;;  %1795 = vmatmul.mubr.f32.vlgmr.msra.gmra.mxu0 %v2349_v62 }
  0xb5   : > { %1830 = vmatprep.subr.mxu1 %v2338_v57  ;;  %1797 = vmatprep.mubr.f32.mxu0 %v2446_v7 }
  0xb6   : > { %1831 = vmatpush3.msra.mxu1 %v2338_v57  ;;  %1838 = vmatprep.mubr.f32.mxu1 %v2346_v61 }
  0xb7   : > { %1832 = vmatprep.subr.mxu1 %v2361_v8 }
  0xb8   : > { %1833 = vmatpush3.msra.mxu1 %v2361_v8  ;;  %1798 = vmatmul.mubr.f32.gmra.mxu0 %v2449_v12 }
  0xb9   : > { %1834 = vmatprep.subr.mxu1 %v2376_v31  ;;  %1800 = vmatprep.mubr.f32.mxu0 %v2463_v44 }
  0xba   : > { %1835 = vmatpush3.msra.mxu1 %v2376_v31 }
  0xbb   : > { %1836 = vmatprep.subr.mxu1 %v2388_v38 }
  0xbc   : > { %1837 = vmatpush3.msra.mxu1 %v2388_v38  ;;  %1801 = vmatmul.mubr.f32.gmra.mxu0 %v2466_v15 }
  0xbd   : > { %1839 = vmatmul.mubr.f32.vlgmr.msra.gmra.mxu1 %v2349_v62  ;;  %1803 = vmatprep.mubr.f32.mxu0 %v2487_v2 }
  0xbe   : > { %1841 = vmatprep.mubr.f32.mxu1 %v2446_v7 }
  0xc0   : > { %1804 = vmatmul.mubr.f32.gmra.mxu0 %v2494_v20 }
  0xc1   : > { %1842 = vmatmul.mubr.f32.gmra.mxu1 %v2449_v12 }
  0xc2   : > { %1844 = vmatprep.mubr.f32.mxu1 %v2463_v44 }
  0xc5   : > { %1845 = vmatmul.mubr.f32.gmra.mxu1 %v2466_v15 }
  0xc6   : > { %1847 = vmatprep.mubr.f32.mxu1 %v2487_v2 }
  0xc9   : > { %1848 = vmatmul.mubr.f32.gmra.mxu1 %v2494_v20 }
 0x125   : > { %v1620_v5 = vpop.f32.mrf.mxu0 }
 0x127   : > { %v387_v9 = vpop.f32.mrf.mxu0 }
 0x12d   : > { %v1664_v16 = vpop.f32.mrf.mxu1 }
 0x12e   : > { %v615_v56 = vadd.f32 %v1664_v16, %v1620_v5 }
 0x12f   : > { %v608_v27 = vpop.f32.mrf.mxu1 }
 0x130   : > { %v609_v36 = vadd.f32 %v608_v27, %v387_v9 }
 0x13a   : > { %v1623_v10 = vpop.f32.mrf.mxu0 }
 0x13c   : > { %v407_v11 = vpop.f32.mrf.mxu0 }
 0x13f   : > { %v1626_v24 = vpop.f32.mrf.mxu0 }
 0x141   : > { %v1667_v28 = vpop.f32.mrf.mxu1  ;;  %v427_v34 = vpop.f32.mrf.mxu0 }
 0x142   : > { %v627_v14 = vadd.f32 %v1667_v28, %v1623_v10 }
 0x143   : > { %v620_v39 = vpop.f32.mrf.mxu1 }
 0x144   : > { %v621_v19 = vadd.f32 %v620_v39, %v407_v11 }
 0x145   : > { %v1629_v42 = vpop.f32.mrf.mxu0 }
 0x147   : > { %v1670_v45 = vpop.f32.mrf.mxu1  ;;  %v447_v47 = vpop.f32.mrf.mxu0 }
 0x148   : > { %v639_v33 = vadd.f32 %v1670_v45, %v1626_v24 }
 0x149   : > { %v632_v52 = vpop.f32.mrf.mxu1 }
 0x14a   : > { %v633_v55 = vadd.f32 %v632_v52, %v427_v34 }
 0x14c   : > { %v1708_v57 = vpop.f32.mrf.mxu0 }
 0x14d   : > { %v1673_v58 = vpop.f32.mrf.mxu1  ;;  %v762_v7 = vadd.f32 %v1708_v57, %v615_v56 }
 0x14e   : > { %v754_v61 = vpop.f32.mrf.mxu0  ;;  %v651_v3 = vadd.f32 %v1673_v58, %v1629_v42 }
 0x14f   : > { %v644_v62 = vpop.f32.mrf.mxu1  ;;  %v755_v44 = vadd.f32 %v754_v61, %v609_v36 }
 0x150   : > { %v645_v24 = vadd.f32 %v644_v62, %v447_v47 }
 0x152   : > { %v1711_v1 = vpop.f32.mrf.mxu0 }
 0x153   : > { %v776_v2 = vadd.f32 %v1711_v1, %v627_v14 }
 0x154   : > { %v768_v8 = vpop.f32.mrf.mxu0 }
 0x155   : > { %v769_v0 = vadd.f32 %v768_v8, %v621_v19 }
 0x157   : > { %v1752_v6 = vpop.f32.mrf.mxu1  ;;  %v1714_v25 = vpop.f32.mrf.mxu0 }
 0x158   : > { %v901_v15 = vadd.f32 %v1752_v6, %v762_v7  ;;  %v790_v53 = vadd.f32 %v1714_v25, %v639_v33 }
 0x159   : > { %v892_v13 = vpop.f32.mrf.mxu1  ;;  %v782_v31 = vpop.f32.mrf.mxu0 }
 0x15a   : > { %v893_v20 = vadd.f32 %v892_v13, %v755_v44  ;;  %v783_v4 = vadd.f32 %v782_v31, %v633_v55 }
 0x15d   : > { %v1755_v30 = vpop.f32.mrf.mxu1  ;;  %v1717_v37 = vpop.f32.mrf.mxu0 }
 0x15e   : > { %v917_v63 = vadd.f32 %v1755_v30, %v776_v2  ;;  %v804_v27 = vadd.f32 %v1717_v37, %v651_v3 }
 0x15f   : > { %v908_v32 = vpop.f32.mrf.mxu1  ;;  %v796_v40 = vpop.f32.mrf.mxu0 }
 0x160   : > { %v909_v21 = vadd.f32 %v908_v32, %v769_v0  ;;  %v797_v57 = vadd.f32 %v796_v40, %v645_v24 }
 0x163   : > { %v1758_v38 = vpop.f32.mrf.mxu1 }
 0x164   : > { %v933_v9 = vadd.f32 %v1758_v38, %v790_v53 }
 0x165   : > { %v924_v49 = vpop.f32.mrf.mxu1 }
 0x166   : > { %v925_v39 = vadd.f32 %v924_v49, %v783_v4 }
 0x168   : > { %v1761_v12 = vpop.f32.mrf.mxu1 }
 0x169   : > { %v949_v61 = vadd.f32 %v1761_v12, %v804_v27 }
 0x16a   : > { %v940_v54 = vpop.f32.mrf.mxu1 }
 0x16b   : > { %v941_v13 = vadd.f32 %v940_v54, %v797_v57 }
 0x174   : > { %v1796_v51 = vpop.f32.mrf.mxu0 }
 0x175   : > { %v1074_v35 = vadd.f32 %v1796_v51, %v901_v15 }
 0x176   : > { %v1067_v59 = vpop.f32.mrf.mxu0 }
 0x177   : > { %v1068_v46 = vadd.f32 %v1067_v59, %v893_v20 }
 0x178   : > { %v1799_v50 = vpop.f32.mrf.mxu0 }
 0x179   : > { %v1086_v22 = vadd.f32 %v1799_v50, %v917_v63 }
 0x17a   : > { %v1079_v17 = vpop.f32.mrf.mxu0 }
 0x17b   : > { %v1080_v10 = vadd.f32 %v1079_v17, %v909_v21 }
 0x17c   : > { %v1802_v41 = vpop.f32.mrf.mxu0 }
 0x17d   : > { %v1840_v43 = vpop.f32.mrf.mxu1  ;;  %v1098_v42 = vadd.f32 %v1802_v41, %v933_v9 }
 0x17e   : > { %v1203_v18 = vadd.f32 %v1840_v43, %v1074_v35  ;;  %v1091_v60 = vpop.f32.mrf.mxu0 }
 0x17f   : > { %v1196_v29 = vpop.f32.mrf.mxu1  ;;  %v1092_v1 = vadd.f32 %v1091_v60, %v925_v39 }
 0x180   : > { %v1277_v23 = vadd.f32 %v1434_v48, %v1203_v18  ;;  %v1197_v26 = vadd.f32 %v1196_v29, %v1068_v46  ;;  %v1805_v28 = vpop.f32.mrf.mxu0 }
 0x181   : > { %v1843_v5 = vpop.f32.mrf.mxu1  ;;  %v1110_v25 = vadd.f32 %v1805_v28, %v949_v61 }
 0x182   : > { %1285 = vst [vmem:[%s2684_s24 + $0x8] sm:$0xff] %v1277_v23  ;;  %v1276_v11 = vadd.f32 %v1434_v48, %v1197_v26  ;;  %v1215_v16 = vadd.f32 %v1843_v5, %v1086_v22  ;;  %v1103_v47 = vpop.f32.mrf.mxu0 }
 0x183   : > { %v1208_v34 = vpop.f32.mrf.mxu1  ;;  %v1104_v37 = vadd.f32 %v1103_v47, %v941_v13 }
 0x184   : > { %1284 = vst [vmem:[%s2684_s24] sm:$0xff] %v1276_v11  ;;  %v1279_v45 = vadd.f32 %v1434_v48, %v1215_v16  ;;  %v1209_v52 = vadd.f32 %v1208_v34, %v1080_v10 }
 0x185   : > { %v1846_v58 = vpop.f32.mrf.mxu1 }
 0x186   : > { %1287 = vst [vmem:[%s2684_s24 + $0x18] sm:$0xff] %v1279_v45  ;;  %v1278_v6 = vadd.f32 %v1434_v48, %v1209_v52  ;;  %v1227_v8 = vadd.f32 %v1846_v58, %v1098_v42 }
 0x187   : > { %v1220_v62 = vpop.f32.mrf.mxu1 }
 0x188   : > { %1286 = vst [vmem:[%s2684_s24 + $0x10] sm:$0xff] %v1278_v6  ;;  %v1281_v30 = vadd.f32 %v1434_v48, %v1227_v8  ;;  %v1221_v31 = vadd.f32 %v1220_v62, %v1092_v1 }
 0x189   : > { %v1849_v32 = vpop.f32.mrf.mxu1 }
 0x18a   : > { %1289 = vst [vmem:[%s2684_s24 + $0x28] sm:$0xff] %v1281_v30  ;;  %v1280_v38 = vadd.f32 %v1434_v48, %v1221_v31  ;;  %v1239_v40 = vadd.f32 %v1849_v32, %v1110_v25 }
 0x18b   : > { %v1232_v49 = vpop.f32.mrf.mxu1 }
 0x18c   : > { %1288 = vst [vmem:[%s2684_s24 + $0x20] sm:$0xff] %v1280_v38  ;;  %v1283_v51 = vadd.f32 %v1434_v48, %v1239_v40  ;;  %v1233_v56 = vadd.f32 %v1232_v49, %v1104_v37 }
 0x18e   : > { %1291 = vst [vmem:[%s2684_s24 + $0x38] sm:$0xff] %v1283_v51  ;;  %v1282_v59 = vadd.f32 %v1434_v48, %v1233_v56 }
 0x190   : > { %1290 = vst [vmem:[%s2684_s24 + $0x30] sm:$0xff] %v1282_v59 }
 0x191   : > { %1994 = shalt.err (!%p1991_p5)
}
 0x192   : > { %s1995_s18 = scalar_lea.hbm %s2699_s21, 1024  ;;  %s1999_s27 = scalar_lea.hbm %s2752_s3, 2048 }
 0x193   : > { %p1996_p7 = scmp.ne.s32.totalorder %s2699_s21, %s1995_s18  ;;  %p2000_p9 = scmp.lt.s32.totalorder %s2699_s21, %s2752_s3 }
 0x194   : > { %p2001_p11 = scmp.lt.s32.totalorder %s1999_s27, %s1995_s18 }
 0x195   : > { %p1997_p4 = pnand %p1996_p7, %p2184_p13 }
 0x196   : > { %p2002_p10 = por %p2001_p11, %p2000_p9 }
 0x197   : > { %p1998_p6 = pneg %p1997_p4 }
 0x199   : > { %p2003_p1 = pnand %p2002_p10, %p1998_p6 }
 0x19b   : > { %2006 = shalt.err (!%p2003_p1)
}
 0x19c   : > { %s2072_s24 = smov 128   ;;  %s2073_s29 = smov 8  }
 0x19d   : > { %1856 = dma.vmem_to_hbm [thread:$0]  (%p2184_p13), %s2693_s30, 1024, %s2699_s21, %s1293_s10, %s2072_s24, %s2072_s24, %s2073_s29  }
 0x19e PF: > { %s1322_s5 = sand.u32 1, %s2045_s12   ;;  %p2782_p8 = scmp.ne.s32.totalorder %s2765_s23, 0 }
 0x19f   : > { %p2783_p12 = scmp.ge.s32.totalorder %s2065_s17, 2  ;;  %s1323_s6 = scalar_lea.sflag [#allocation5], %s1322_s5 }
 0x1a1   : > { %p1867_p0 = pnand %p2783_p12, %p2782_p8 }
 0x1a3   : > { %p1868_p2 = pneg %p1867_p0 }
 0x1a5   : > { %2040 = dma.done.wait (%p1868_p2), %s1323_s6, 1024  }
 0x1a6   : > { %2042 = vsyncadd (%p1868_p2), %s1323_s6, 4294966272  ;;  %s20_s17 = sadd.s32 1, %s2065_s17   ;;  %s2784_s12 = smov %s2049_s13 }
 0x1a7   : > { %p17_p3 = scmp.ge.s32.totalorder %s20_s17, 4   ;;  %s2785_s13 = smov %s2053_s14 }
 0x1a8   : > { %s2786_s14 = smov %s2193_s19  ;;  %s2787_s15 = smov %s2061_s16 }
 0x1a9   : > { %s2788_s16 = smov %s2790_s28  ;;  %19 = sbr.rel (!%p17_p3) target bundleno = 7 (0x7), region = 93 }
 0x1ae   :  { %1328 = vsyncpa [#allocation4], 1 }
 0x1af   :  { %1330 = vsyncpa [#allocation4 + $0x1], 1 }
 0x1b0   :  { %1331 = vsyncpa [#allocation7], 1 }
 0x1b1   :  { %1332 = vsyncpa [#allocation5], 1 }
 0x1b2   :  { %1334 = vsyncpa [#allocation5 + $0x1], 1 }

</bundles_post_ra>
